<compile_context>
chip_gen: v7x
topology: tpu7x:2x2x1
jax: 0.10.0
libtpu: 0.0.40
codegen_flags: <defaults>
</compile_context>

<pallas_src>
import functools

import jax
import jax.numpy as jnp
from jax.experimental import pallas as pl
from jax.experimental.pallas import tpu as pltpu


def _triplet_kernel(a_ref, p_ref, n_ref, out_ref, *, margin, eps,
                    valid_rows, block_rows, chunks, feat, needs_mask):
    a = a_ref[...].astype(jnp.float32)
    p = p_ref[...].astype(jnp.float32)
    n = n_ref[...].astype(jnp.float32)

    # F.pairwise_distance(x1, x2, p=2, eps=1e-6) == ||x1 - x2 + eps||_2 over last dim.
    sq_pos = (a - p + eps) ** 2            # (TB, chunks*feat), lane-dense
    sq_neg = (a - n + eps) ** 2

    if needs_mask:
        # OOB-padded rows of the ragged last tile contain undefined data; discard
        # them with a select AFTER the sqrt/relu so NaN/Inf can never propagate.
        row0 = pl.program_id(0) * block_rows
        row_ids = row0 + jax.lax.broadcasted_iota(jnp.int32, (block_rows, 1), 0)
        rmask = row_ids < valid_rows

    total = jnp.zeros((block_rows, 1), jnp.float32)
    for c in range(chunks):                # static unroll; chunks == 1 when not folded
        sl = slice(c * feat, (c + 1) * feat)
        dpos = jnp.sqrt(jnp.sum(sq_pos[:, sl], axis=-1, keepdims=True))  # (TB, 1)
        dneg = jnp.sqrt(jnp.sum(sq_neg[:, sl], axis=-1, keepdims=True))  # (TB, 1)
        per_row = jnp.maximum(margin + dpos - dneg, 0.0)                 # (TB, 1)
        if needs_mask:
            per_row = jnp.where(rmask, per_row, 0.0)
        total = total + per_row

    out_ref[0, 0] = jnp.sum(total)         # per-tile partial sum (final /B in wrapper)


def _round_up(x, m):
    return ((x + m - 1) // m) * m


def _default_vmem_limit():
    # Generation-appropriate scoped-VMEM limit: 3/4 of physical, capped at 96 MiB.
    # (v5e/v6e: 128 MiB physical -> 96 MiB; v7x: 64 MiB physical -> 48 MiB.)
    try:
        phys = int(pltpu.get_tpu_info().vmem_capacity_bytes)
    except Exception:
        phys = 64 * 1024 * 1024            # conservative fallback (v7x per-TC)
    return min((phys * 3) // 4, 96 * 1024 * 1024)


def _choose_block_rows(rows, feat, itemsize, target_step_bytes, vmem_limit_bytes):
    # Resident bytes per tile row:
    #   inputs: 3 streams x 2 pipeline buffers at the input dtype
    #   temps : ~5 f32 (TB, feat) intermediates (a/p/n upcasts + squared diffs)
    per_row_resident = 3 * 2 * feat * itemsize + 5 * feat * 4
    cap_vmem = max(8, int(0.8 * vmem_limit_bytes) // per_row_resident)
    # Per-step HBM traffic target (~8 MiB) to amortize the fixed per-step overhead.
    per_row_step = 3 * feat * itemsize
    cap_target = max(8, target_step_bytes // per_row_step)
    tb = min(cap_vmem, cap_target, rows)
    # v7x megacore: ensure the "parallel" grid axis has >= 2 steps for larger inputs
    # so both TensorCores get work.
    if rows >= 16:
        tb = min(tb, _round_up(-(-rows // 2), 8))
    if tb < rows:
        tb = max(8, (tb // 8) * 8)         # sublane-aligned tiles when actually tiling
    return int(tb)


def triplet_loss(anchor, positive, negative, margin=1.0, eps=1e-6,
                 target_step_bytes=8 * 1024 * 1024, vmem_limit_bytes=None):
    assert anchor.shape == positive.shape == negative.shape
    assert anchor.ndim == 2, "expect (batch, features) embeddings"
    B, D = anchor.shape
    itemsize = jnp.dtype(anchor.dtype).itemsize

    # Lane-density folding: pack k = 128//D rows per lane-dense row (free reshape).
    k = 1
    if D < 128 and 128 % D == 0 and B % (128 // D) == 0:
        k = 128 // D
    rows, feat_eff = B // k, k * D
    if k > 1:
        anchor = anchor.reshape(rows, feat_eff)
        positive = positive.reshape(rows, feat_eff)
        negative = negative.reshape(rows, feat_eff)

    if vmem_limit_bytes is None:
        vmem_limit_bytes = _default_vmem_limit()

    tb = _choose_block_rows(rows, feat_eff, itemsize, target_step_bytes,
                            vmem_limit_bytes)
    num_tiles = pl.cdiv(rows, tb)
    needs_mask = (rows % tb) != 0          # static: full tiles carry no mask work

    kernel = functools.partial(
        _triplet_kernel,
        margin=float(margin), eps=float(eps),
        valid_rows=rows, block_rows=tb, chunks=k, feat=D, needs_mask=needs_mask)

    in_spec = pl.BlockSpec((tb, feat_eff), lambda i: (i, 0))
    partials = pl.pallas_call(
        kernel,
        grid=(num_tiles,),
        out_shape=jax.ShapeDtypeStruct((num_tiles, 1), jnp.float32),
        in_specs=[in_spec, in_spec, in_spec],
        out_specs=pl.BlockSpec((1, 1), lambda i: (i, 0), memory_space=pltpu.SMEM),
        compiler_params=pltpu.CompilerParams(
            dimension_semantics=("parallel",),     # shards tiles across TCs on v7x
            vmem_limit_bytes=int(vmem_limit_bytes)),
        cost_estimate=pl.CostEstimate(
            flops=12 * B * D,
            transcendentals=2 * B,
            bytes_accessed=3 * B * D * itemsize + num_tiles * 4),
    )(anchor, positive, negative)

    return jnp.sum(partials) / B           # true B, not num_tiles * tb


def _reference(anchor, positive, negative, margin=1.0, eps=1e-6):
    dpos = jnp.sqrt(jnp.sum((anchor - positive + eps) ** 2, axis=-1))
    dneg = jnp.sqrt(jnp.sum((anchor - negative + eps) ** 2, axis=-1))
    return jnp.mean(jnp.maximum(margin + dpos - dneg, 0.0))


if __name__ == "__main__":
    key = jax.random.PRNGKey(0)
    keys = jax.random.split(key, 9)

    # 1) Small module-like shape: D=32 folds to lane-dense rows (2 x 128), one tile.
    B, D = 8, 32
    a = jax.random.normal(keys[0], (B, D), dtype=jnp.float32)
    p = jax.random.normal(keys[1], (B, D), dtype=jnp.float32)
    n = jax.random.normal(keys[2], (B, D), dtype=jnp.float32)
    loss = jax.block_until_ready(triplet_loss(a, p, n, margin=1.0))
    ref = _reference(a, p, n, margin=1.0)
    assert jnp.allclose(loss, ref, atol=2e-5, rtol=2e-5), (loss, ref)

    # 2) Folded + tiled + ragged last tile + megacore split:
    #    B=72, D=32 -> 18 folded rows -> 2 tiles of 16, last tile has 2 valid rows.
    B2, D2 = 72, 32
    a2 = jax.random.normal(keys[3], (B2, D2), dtype=jnp.float32)
    p2 = jax.random.normal(keys[4], (B2, D2), dtype=jnp.float32)
    n2 = jax.random.normal(keys[5], (B2, D2), dtype=jnp.float32)
    loss2 = jax.block_until_ready(triplet_loss(a2, p2, n2, margin=1.0))
    ref2 = _reference(a2, p2, n2, margin=1.0)
    assert jnp.allclose(loss2, ref2, atol=2e-5, rtol=2e-5), (loss2, ref2)

    # 3) No folding (128 % D != 0), tiled + ragged: 24 x 160 -> 2 tiles of 16 rows.
    B3, D3 = 24, 160
    a3 = jax.random.normal(keys[6], (B3, D3), dtype=jnp.float32)
    p3 = jax.random.normal(keys[7], (B3, D3), dtype=jnp.float32)
    n3 = jax.random.normal(keys[8], (B3, D3), dtype=jnp.float32)
    loss3 = jax.block_until_ready(triplet_loss(a3, p3, n3, margin=1.0))
    ref3 = _reference(a3, p3, n3, margin=1.0)
    assert jnp.allclose(loss3, ref3, atol=2e-5, rtol=2e-5), (loss3, ref3)

    print("KERNEL_OK")
</pallas_src>

<mosaic_0001>
module attributes {stable_mosaic.version = 11 : i64} {
  func.func @_triplet_kernel(%arg0: i32, %arg1: memref<2x128xf32, #tpu.memory_space<vmem>>, %arg2: memref<2x128xf32, #tpu.memory_space<vmem>>, %arg3: memref<2x128xf32, #tpu.memory_space<vmem>>, %arg4: memref<1x1xf32, #tpu.memory_space<smem>>) attributes {dimension_semantics = [#tpu.dimension_semantics<parallel>], iteration_bounds = array<i64: 1>, scalar_prefetch = 0 : i64, scratch_operands = 0 : i64, tpu.core_type = #tpu.core_type<tc>, window_params = [{transform_indices = @transform_0, window_bounds = array<i64: 2, 128>}, {transform_indices = @transform_1, window_bounds = array<i64: 2, 128>}, {transform_indices = @transform_2, window_bounds = array<i64: 2, 128>}, {transform_indices = @transform_3, window_bounds = array<i64: 1, 1>}]} {
    %c0 = arith.constant 0 : index
    %c0_0 = arith.constant 0 : index
    %0 = vector.load %arg1[%c0, %c0_0] : memref<2x128xf32, #tpu.memory_space<vmem>>, vector<2x128xf32>
    %c0_1 = arith.constant 0 : index
    %c0_2 = arith.constant 0 : index
    %1 = vector.load %arg2[%c0_1, %c0_2] : memref<2x128xf32, #tpu.memory_space<vmem>>, vector<2x128xf32>
    %c0_3 = arith.constant 0 : index
    %c0_4 = arith.constant 0 : index
    %2 = vector.load %arg3[%c0_3, %c0_4] : memref<2x128xf32, #tpu.memory_space<vmem>>, vector<2x128xf32>
    %3 = arith.subf %0, %1 : vector<2x128xf32>
    %cst = arith.constant 9.99999997E-7 : f32
    %4 = vector.broadcast %cst : f32 to vector<2x128xf32>
    %5 = arith.addf %3, %4 : vector<2x128xf32>
    %6 = arith.mulf %5, %5 : vector<2x128xf32>
    %7 = arith.subf %0, %2 : vector<2x128xf32>
    %cst_5 = arith.constant 9.99999997E-7 : f32
    %8 = vector.broadcast %cst_5 : f32 to vector<2x128xf32>
    %9 = arith.addf %7, %8 : vector<2x128xf32>
    %10 = arith.mulf %9, %9 : vector<2x128xf32>
    %cst_6 = arith.constant 0.000000e+00 : f32
    %11 = vector.broadcast %cst_6 : f32 to vector<2x1xf32>
    %12 = vector.extract_strided_slice %6 {offsets = [0, 0], sizes = [2, 32], strides = [1, 1]} : vector<2x128xf32> to vector<2x32xf32>
    %cst_7 = arith.constant dense<0.000000e+00> : vector<2xf32>
    %13 = vector.multi_reduction <add>, %12, %cst_7 [1] : vector<2x32xf32> to vector<2xf32>
    %14 = vector.shape_cast %13 : vector<2xf32> to vector<2x1xf32>
    %15 = math.sqrt %14 : vector<2x1xf32>
    %16 = vector.extract_strided_slice %10 {offsets = [0, 0], sizes = [2, 32], strides = [1, 1]} : vector<2x128xf32> to vector<2x32xf32>
    %cst_8 = arith.constant dense<0.000000e+00> : vector<2xf32>
    %17 = vector.multi_reduction <add>, %16, %cst_8 [1] : vector<2x32xf32> to vector<2xf32>
    %18 = vector.shape_cast %17 : vector<2xf32> to vector<2x1xf32>
    %19 = math.sqrt %18 : vector<2x1xf32>
    %cst_9 = arith.constant 1.000000e+00 : f32
    %20 = vector.broadcast %cst_9 : f32 to vector<2x1xf32>
    %21 = arith.addf %20, %15 : vector<2x1xf32>
    %22 = arith.subf %21, %19 : vector<2x1xf32>
    %cst_10 = arith.constant 0.000000e+00 : f32
    %23 = vector.broadcast %cst_10 : f32 to vector<2x1xf32>
    %24 = arith.maximumf %22, %23 : vector<2x1xf32>
    %25 = arith.addf %11, %24 : vector<2x1xf32>
    %26 = vector.extract_strided_slice %6 {offsets = [0, 32], sizes = [2, 32], strides = [1, 1]} : vector<2x128xf32> to vector<2x32xf32>
    %cst_11 = arith.constant dense<0.000000e+00> : vector<2xf32>
    %27 = vector.multi_reduction <add>, %26, %cst_11 [1] : vector<2x32xf32> to vector<2xf32>
    %28 = vector.shape_cast %27 : vector<2xf32> to vector<2x1xf32>
    %29 = math.sqrt %28 : vector<2x1xf32>
    %30 = vector.extract_strided_slice %10 {offsets = [0, 32], sizes = [2, 32], strides = [1, 1]} : vector<2x128xf32> to vector<2x32xf32>
    %cst_12 = arith.constant dense<0.000000e+00> : vector<2xf32>
    %31 = vector.multi_reduction <add>, %30, %cst_12 [1] : vector<2x32xf32> to vector<2xf32>
    %32 = vector.shape_cast %31 : vector<2xf32> to vector<2x1xf32>
    %33 = math.sqrt %32 : vector<2x1xf32>
    %cst_13 = arith.constant 1.000000e+00 : f32
    %34 = vector.broadcast %cst_13 : f32 to vector<2x1xf32>
    %35 = arith.addf %34, %29 : vector<2x1xf32>
    %36 = arith.subf %35, %33 : vector<2x1xf32>
    %cst_14 = arith.constant 0.000000e+00 : f32
    %37 = vector.broadcast %cst_14 : f32 to vector<2x1xf32>
    %38 = arith.maximumf %36, %37 : vector<2x1xf32>
    %39 = arith.addf %25, %38 : vector<2x1xf32>
    %40 = vector.extract_strided_slice %6 {offsets = [0, 64], sizes = [2, 32], strides = [1, 1]} : vector<2x128xf32> to vector<2x32xf32>
    %cst_15 = arith.constant dense<0.000000e+00> : vector<2xf32>
    %41 = vector.multi_reduction <add>, %40, %cst_15 [1] : vector<2x32xf32> to vector<2xf32>
    %42 = vector.shape_cast %41 : vector<2xf32> to vector<2x1xf32>
    %43 = math.sqrt %42 : vector<2x1xf32>
    %44 = vector.extract_strided_slice %10 {offsets = [0, 64], sizes = [2, 32], strides = [1, 1]} : vector<2x128xf32> to vector<2x32xf32>
    %cst_16 = arith.constant dense<0.000000e+00> : vector<2xf32>
    %45 = vector.multi_reduction <add>, %44, %cst_16 [1] : vector<2x32xf32> to vector<2xf32>
    %46 = vector.shape_cast %45 : vector<2xf32> to vector<2x1xf32>
    %47 = math.sqrt %46 : vector<2x1xf32>
    %cst_17 = arith.constant 1.000000e+00 : f32
    %48 = vector.broadcast %cst_17 : f32 to vector<2x1xf32>
    %49 = arith.addf %48, %43 : vector<2x1xf32>
    %50 = arith.subf %49, %47 : vector<2x1xf32>
    %cst_18 = arith.constant 0.000000e+00 : f32
    %51 = vector.broadcast %cst_18 : f32 to vector<2x1xf32>
    %52 = arith.maximumf %50, %51 : vector<2x1xf32>
    %53 = arith.addf %39, %52 : vector<2x1xf32>
    %54 = vector.extract_strided_slice %6 {offsets = [0, 96], sizes = [2, 32], strides = [1, 1]} : vector<2x128xf32> to vector<2x32xf32>
    %cst_19 = arith.constant dense<0.000000e+00> : vector<2xf32>
    %55 = vector.multi_reduction <add>, %54, %cst_19 [1] : vector<2x32xf32> to vector<2xf32>
    %56 = vector.shape_cast %55 : vector<2xf32> to vector<2x1xf32>
    %57 = math.sqrt %56 : vector<2x1xf32>
    %58 = vector.extract_strided_slice %10 {offsets = [0, 96], sizes = [2, 32], strides = [1, 1]} : vector<2x128xf32> to vector<2x32xf32>
    %cst_20 = arith.constant dense<0.000000e+00> : vector<2xf32>
    %59 = vector.multi_reduction <add>, %58, %cst_20 [1] : vector<2x32xf32> to vector<2xf32>
    %60 = vector.shape_cast %59 : vector<2xf32> to vector<2x1xf32>
    %61 = math.sqrt %60 : vector<2x1xf32>
    %cst_21 = arith.constant 1.000000e+00 : f32
    %62 = vector.broadcast %cst_21 : f32 to vector<2x1xf32>
    %63 = arith.addf %62, %57 : vector<2x1xf32>
    %64 = arith.subf %63, %61 : vector<2x1xf32>
    %cst_22 = arith.constant 0.000000e+00 : f32
    %65 = vector.broadcast %cst_22 : f32 to vector<2x1xf32>
    %66 = arith.maximumf %64, %65 : vector<2x1xf32>
    %67 = arith.addf %53, %66 : vector<2x1xf32>
    %68 = vector.shape_cast %67 : vector<2x1xf32> to vector<1x2x1xf32>
    %cst_23 = arith.constant dense<0.000000e+00> : vector<1xf32>
    %69 = vector.multi_reduction <add>, %68, %cst_23 [1, 2] : vector<1x2x1xf32> to vector<1xf32>
    %70 = vector.shape_cast %69 : vector<1xf32> to vector<1x1x1xf32>
    %71 = vector.extract %70[0, 0, 0] : f32 from vector<1x1x1xf32>
    %c0_24 = arith.constant 0 : index
    %c0_25 = arith.constant 0 : index
    %72 = memref.load %arg4[%c0_24, %c0_25] : memref<1x1xf32, #tpu.memory_space<smem>>
    memref.store %71, %arg4[%c0_24, %c0_25] : memref<1x1xf32, #tpu.memory_space<smem>>
    return
  }
  func.func @transform_0(%arg0: i32) -> (i32, i32) {
    %c0_i32 = arith.constant 0 : i32
    %c0_i32_0 = arith.constant 0 : i32
    return %arg0, %c0_i32 : i32, i32
  }
  func.func @transform_1(%arg0: i32) -> (i32, i32) {
    %c0_i32 = arith.constant 0 : i32
    %c0_i32_0 = arith.constant 0 : i32
    return %arg0, %c0_i32 : i32, i32
  }
  func.func @transform_2(%arg0: i32) -> (i32, i32) {
    %c0_i32 = arith.constant 0 : i32
    %c0_i32_0 = arith.constant 0 : i32
    return %arg0, %c0_i32 : i32, i32
  }
  func.func @transform_3(%arg0: i32) -> (i32, i32) {
    %c0_i32 = arith.constant 0 : i32
    %c0_i32_0 = arith.constant 0 : i32
    return %arg0, %c0_i32 : i32, i32
  }
}

</mosaic_0001>

<bundles_post_ra>
// kernel: tpu_custom_call.1
= control target key start
LH: loop header
LB: loop body
LE: loop exit
PB: predicated region body
PF: predicated region fallthrough
CT: control target
= control target key end

     0   :  { %8 = vsyncpa [#allocation3], 0  ;;  %s302_s0 = inlined_call_operand.hbm [shape: f32[2,128], index: 0, kind: input, shape index: {}]   ;;  %s303_s1 = inlined_call_operand.vmem [shape: f32[2,128], index: 1, kind: input, shape index: {}]   ;;  %s304_s2 = inlined_call_operand.vmem [shape: f32[2,128], index: 2, kind: input, shape index: {}]   ;;  %s305_s3 = inlined_call_operand.hbm [shape: f32[1,1], index: 3, kind: output, shape index: {}]  }
   0x1   :  { %9 = vsyncpa [#allocation4], 0  ;;  %s239_s12 = smov [#allocation2]   ;;  %s203_s16 = scalar_lea.hbm %s302_s0, 32 }
   0x2   :  { %s16_s13 = sshll.u32 %s239_s12, 4  ;;  %p204_p0 = scmp.ne.s32.totalorder %s302_s0, %s203_s16  ;;  %s17_s13 = int_to_ptr.vmem [resolvable:$true] %s16_s13 }
   0x3   :  { %p207_p1 = scmp.lt.u32.totalorder %s203_s16, %s302_s0 }
   0x5   :  { %p209_p2 = pnand %p207_p1, %p204_p0 }
   0x7   :  { %212 = shalt.err (!%p209_p2)
}
   0x8   :  { %s213_s21 = scalar_lea.vmem %s17_s13, 32  ;;  %p218_p4 = scmp.lt.s32.totalorder %s17_s13, %s17_s13 }
   0x9   :  { %p214_p3 = scmp.ne.s32.totalorder %s17_s13, %s213_s21  ;;  %p219_p5 = scmp.lt.s32.totalorder %s213_s21, %s213_s21 }
   0xb   :  { %p220_p6 = por %p219_p5, %p218_p4 }
   0xd   :  { %p221_p7 = pnand %p220_p6, %p214_p3 }
   0xf   :  { %224 = shalt.err (!%p221_p7)
}
  0x10   :  { %19 = dma.hbm_to_vmem [thread:$0]  %s302_s0, 32, %s17_s13, [#allocation3]  }
  0x11   :  { %235 = dma.done.wait [#allocation3], 32  }
  0x12   :  { %236 = vsyncadd [#allocation3], 4294967264  ;;  %v27_v0 = vld [vmem:[#allocation2] sm:$0x3]  ;;  %s240_s28 = smov 96   ;;  %s241_s29 = smov 64  }
  0x13   :  { %v28_v1 = vld [vmem:[%s303_s1] sm:$0x3]  ;;  %s242_s0 = smov 32   ;;  %vm36_vm0 = vcmask 254976   ;;  %s225_s4 = scalar_lea.hbm %s305_s3, 16 }
  0x14   :  { %v29_v2 = vld [vmem:[%s304_s2] sm:$0x3]  ;;  %v30_v3 = vsub.f32 %v27_v0, %v28_v1  ;;  %p226_p8 = scmp.ne.s32.totalorder %s305_s3, %s225_s4  ;;  %p229_p9 = scmp.lt.u32.totalorder %s225_s4, %s305_s3 }
  0x15   :  { %v33_v4 = vsub.f32 %v27_v0, %v29_v2 }
  0x16   :  { %v31_v5 = vadd.f32 1e-06, %v30_v3  ;;  %p231_p10 = pnand %p229_p9, %p226_p8 }
  0x17   :  { %v34_v6 = vadd.f32 1e-06, %v33_v4 }
  0x18   :  { %v32_v7 = vmul.f32 %v31_v5, %v31_v5 }
  0x19   :  { %v35_v8 = vmul.f32 %v34_v6, %v34_v6 }
  0x1a   :  { %62 = vrot.lane.b32.xlu0 %v32_v7, %s240_s28  ;;  %93 = vrot.lane.b32.xlu1 %v32_v7, %s241_s29  ;;  %v37_v9 = vsel %vm36_vm0, %v32_v7, 0.0 }
  0x1b   :  { %v47_v10 = vsel %vm36_vm0, %v35_v8, 0.0 }
  0x1e   :  { %76 = vrot.lane.b32.xlu0 %v35_v8, %s240_s28  ;;  %106 = vrot.lane.b32.xlu1 %v35_v8, %s241_s29 }
  0x22   :  { %123 = vrot.lane.b32.xlu0 %v32_v7, %s242_s0  ;;  %136 = vrot.lane.b32.xlu1 %v35_v8, %s242_s0 }
  0x41   :  { %38 = vadd.xlane.f32.xlu0 %v37_v9 }
  0x45   :  { %48 = vadd.xlane.f32.xlu0 %v47_v10 }
  0x8c   :  { %v63_v11 = vpop.permute.xlu0 %62  ;;  %v94_v12 = vpop.permute.xlu1 %93 }
  0x8d   :  { %v65_v13 = vsel %vm36_vm0, %v63_v11, 0.0  ;;  %v96_v14 = vsel %vm36_vm0, %v94_v12, 0.0 }
  0x8e   :  { %66 = vadd.xlane.f32.xlu1 %v65_v13 }
  0x90   :  { %v77_v15 = vpop.permute.xlu0 %76  ;;  %v107_v16 = vpop.permute.xlu1 %106 }
  0x91   :  { %v79_v17 = vsel %vm36_vm0, %v77_v15, 0.0  ;;  %v109_v18 = vsel %vm36_vm0, %v107_v16, 0.0 }
  0x92   :  { %97 = vadd.xlane.f32.xlu1 %v96_v14  ;;  %80 = vadd.xlane.f32.xlu0 %v79_v17 }
  0x94   :  { %v124_v19 = vpop.permute.xlu0 %123  ;;  %v137_v20 = vpop.permute.xlu1 %136 }
  0x95   :  { %v126_v21 = vsel %vm36_vm0, %v124_v19, 0.0  ;;  %v139_v22 = vsel %vm36_vm0, %v137_v20, 0.0 }
  0x96   :  { %127 = vadd.xlane.f32.xlu1 %v126_v21  ;;  %110 = vadd.xlane.f32.xlu0 %v109_v18 }
  0x9a   :  { %140 = vadd.xlane.f32.xlu0 %v139_v22 }
  0xce   :  { %v39_v23 = vpop.xlane.xlu0 %38 }
  0xcf   :  { %187 = vrsqrt.f32 %v39_v23  ;;  %vm42_vm1 = vcmp.eq.f32.partialorder %v39_v23, inf  ;;  %v45_v33 = vand.u32 2147483648, %v39_v23  ;;  %vm44_vm2 = vcmp.eq.f32.partialorder %v39_v23, 0.0 }
  0xd2   :  { %v49_v24 = vpop.xlane.xlu0 %48 }
  0xd3   :  { %189 = vrsqrt.f32 %v49_v24  ;;  %vm52_vm3 = vcmp.eq.f32.partialorder %v49_v24, inf  ;;  %v55_v39 = vand.u32 2147483648, %v49_v24  ;;  %vm54_vm5 = vcmp.eq.f32.partialorder %v49_v24, 0.0 }
  0xd9   :  { %v188_v26 = vpop.eup %187 }
  0xda   :  { %v41_v29 = vmul.f32 %v188_v26, %v39_v23 }
  0xdc   :  { %v43_v34 = vsel %vm42_vm1, %v39_v23, %v41_v29  ;;  %vm153_vm1 = vcmask 1024  }
  0xdd   :  { %v190_v30 = vpop.eup %189  ;;  %v46_v40 = vsel %vm44_vm2, %v45_v33, %v43_v34 }
  0xde   :  { %v51_v35 = vmul.f32 %v190_v30, %v49_v24  ;;  %v57_v47 = vadd.f32 1.0, %v46_v40 }
  0xe0   :  { %v53_v41 = vsel %vm52_vm3, %v49_v24, %v51_v35 }
  0xe1   :  { %v56_v50 = vsel %vm54_vm5, %v55_v39, %v53_v41 }
  0xe2   :  { %v58_v59 = vsub.f32 %v57_v47, %v56_v50 }
  0xe4   :  { %v59_v12 = vmax.f32 %v58_v59, 0.0 }
 0x11b   :  { %v67_v25 = vpop.xlane.xlu1 %66 }
 0x11c   :  { %191 = vrsqrt.f32 %v67_v25  ;;  %vm70_vm4 = vcmp.eq.f32.partialorder %v67_v25, inf  ;;  %v73_v43 = vand.u32 2147483648, %v67_v25  ;;  %vm72_vm6 = vcmp.eq.f32.partialorder %v67_v25, 0.0 }
 0x11f   :  { %v98_v27 = vpop.xlane.xlu1 %97  ;;  %v81_v28 = vpop.xlane.xlu0 %80 }
 0x120   :  { %193 = vrsqrt.f32 %v98_v27  ;;  %vm101_vm7 = vcmp.eq.f32.partialorder %v98_v27, inf  ;;  %v104_v51 = vand.u32 2147483648, %v98_v27  ;;  %vm84_vm8 = vcmp.eq.f32.partialorder %v81_v28, inf }
 0x121   :  { %195 = vrsqrt.f32 %v81_v28  ;;  %v87_v52 = vand.u32 2147483648, %v81_v28  ;;  %vm86_vm9 = vcmp.eq.f32.partialorder %v81_v28, 0.0  ;;  %vm103_vm10 = vcmp.eq.f32.partialorder %v98_v27, 0.0 }
 0x123   :  { %v128_v31 = vpop.xlane.xlu1 %127  ;;  %v111_v32 = vpop.xlane.xlu0 %110 }
 0x124   :  { %197 = vrsqrt.f32 %v128_v31  ;;  %vm131_vm11 = vcmp.eq.f32.partialorder %v128_v31, inf  ;;  %v134_v0 = vand.u32 2147483648, %v128_v31  ;;  %vm114_vm12 = vcmp.eq.f32.partialorder %v111_v32, inf }
 0x125   :  { %199 = vrsqrt.f32 %v111_v32  ;;  %v117_v1 = vand.u32 2147483648, %v111_v32  ;;  %vm133_vm13 = vcmp.eq.f32.partialorder %v128_v31, 0.0  ;;  %vm116_vm14 = vcmp.eq.f32.partialorder %v111_v32, 0.0 }
 0x126   :  { %v192_v36 = vpop.eup %191 }
 0x127   :  { %v69_v37 = vmul.f32 %v192_v36, %v67_v25  ;;  %v141_v38 = vpop.xlane.xlu0 %140 }
 0x128   :  { %201 = vrsqrt.f32 %v141_v38  ;;  %vm144_vm15 = vcmp.eq.f32.partialorder %v141_v38, inf  ;;  %v147_v10 = vand.u32 2147483648, %v141_v38  ;;  %vm146_vm0 = vcmp.eq.f32.partialorder %v141_v38, 0.0 }
 0x129   :  { %v71_v42 = vsel %vm70_vm4, %v67_v25, %v69_v37 }
 0x12a   :  { %v194_v44 = vpop.eup %193  ;;  %v74_v48 = vsel %vm72_vm6, %v73_v43, %v71_v42 }
 0x12b   :  { %v196_v45 = vpop.eup %195  ;;  %v100_v46 = vmul.f32 %v194_v44, %v98_v27  ;;  %v89_v56 = vadd.f32 1.0, %v74_v48 }
 0x12c   :  { %v83_v49 = vmul.f32 %v196_v45, %v81_v28 }
 0x12d   :  { %v102_v53 = vsel %vm101_vm7, %v98_v27, %v100_v46 }
 0x12e   :  { %v198_v54 = vpop.eup %197  ;;  %v85_v55 = vsel %vm84_vm8, %v81_v28, %v83_v49  ;;  %v105_v61 = vsel %vm103_vm10, %v104_v51, %v102_v53 }
 0x12f   :  { %v200_v57 = vpop.eup %199  ;;  %v130_v58 = vmul.f32 %v198_v54, %v128_v31  ;;  %v88_v60 = vsel %vm86_vm9, %v87_v52, %v85_v55  ;;  %v119_v5 = vadd.f32 1.0, %v105_v61 }
 0x130   :  { %v113_v62 = vmul.f32 %v200_v57, %v111_v32  ;;  %v90_v63 = vsub.f32 %v89_v56, %v88_v60 }
 0x131   :  { %v132_v2 = vsel %vm131_vm11, %v128_v31, %v130_v58 }
 0x132   :  { %v202_v3 = vpop.eup %201  ;;  %v115_v4 = vsel %vm114_vm12, %v111_v32, %v113_v62  ;;  %v135_v6 = vsel %vm133_vm13, %v134_v0, %v132_v2  ;;  %v91_v8 = vmax.f32 %v90_v63, 0.0 }
 0x133   :  { %v143_v7 = vmul.f32 %v202_v3, %v141_v38  ;;  %v118_v9 = vsel %vm116_vm14, %v117_v1, %v115_v4  ;;  %v149_v14 = vadd.f32 1.0, %v135_v6 }
 0x134   :  { %v120_v11 = vsub.f32 %v119_v5, %v118_v9  ;;  %v92_v17 = vadd.f32 %v91_v8, %v59_v12 }
 0x135   :  { %v145_v13 = vsel %vm144_vm15, %v141_v38, %v143_v7 }
 0x136   :  { %v121_v15 = vmax.f32 %v120_v11, 0.0  ;;  %v148_v16 = vsel %vm146_vm0, %v147_v10, %v145_v13 }
 0x137   :  { %v150_v18 = vsub.f32 %v149_v14, %v148_v16 }
 0x138   :  { %v122_v19 = vadd.f32 %v121_v15, %v92_v17 }
 0x139   :  { %v151_v20 = vmax.f32 %v150_v18, 0.0 }
 0x13b   :  { %v152_v21 = vadd.f32 %v151_v20, %v122_v19 }
 0x13d   :  { %v154_v22 = vsel %vm153_vm1, %v152_v21, 0.0 }
 0x13e   :  { %155 = vadd.xlane.f32.xlu1 %v154_v22 }
 0x1cb   :  { %v156_v23 = vpop.xlane.xlu1 %155 }
 0x1cc   :  { %v157_v24 = vrot.slane %v156_v23, 4 }
 0x1ce   :  { %v158_v25 = vadd.f32 %v157_v24, %v156_v23 }
 0x1d0   :  { %v159_v26 = vrot.slane %v158_v25, 2 }
 0x1d2   :  { %v160_v27 = vadd.f32 %v159_v26, %v158_v25 }
 0x1d4   :  { %v161_v28 = vrot.slane %v160_v27, 1 }
 0x1d6   :  { %v162_v29 = vadd.f32 %v161_v28, %v160_v27 }
 0x1d8   :  { %180 = vpush %v162_v29 }
 0x209   :  { %s181_s1 = spop %180 }
 0x20a   :  { %165 = sst [smem:[#allocation5]] %s181_s1 }
 0x20b   :  { %234 = shalt.err (!%p231_p10)
}
 0x20c   :  { %s243_s9 = smov [#allocation5]  }
 0x20d   :  { %173 = dma.smem_to_hbm %s243_s9, 16, %s305_s3, [#allocation4]  }
 0x20e   :  { %237 = dma.done.wait [#allocation4], 16  }
 0x20f   :  { %238 = vsyncadd [#allocation4], 4294967280 }
 0x210   :  { %177 = sfence }
 0x211   :  { %178 = vsyncpa [#allocation3], 1 }
 0x212   :  { %179 = vsyncpa [#allocation4], 1 }

</bundles_post_ra>
